<compile_context>
chip_gen: v7x
topology: tpu7x:2x2x1
jax: 0.10.0
libtpu: 0.0.40
codegen_flags: <defaults>
</compile_context>

<pallas_src>
import functools

import jax
import jax.numpy as jnp
from jax.experimental import pallas as pl
from jax.experimental.pallas import tpu as pltpu

BETA = 1.0            # matches Swish(beta=1)
LANE = 128


def _swish_kernel(x_ref, o_ref):
    x = x_ref[...].astype(jnp.float32)
    # sigmoid via tanh: EUP slot, numerically exact and saturates safely.
    sig = 0.5 * jnp.tanh(0.5 * BETA * x) + 0.5
    o_ref[...] = (x * sig).astype(o_ref.dtype)


def _swish_jax(x):
    """Plain-JAX fallback (single fused XLA elementwise kernel, near roofline)."""
    xf = x.astype(jnp.float32)
    return (xf * (0.5 * jnp.tanh(0.5 * BETA * xf) + 0.5)).astype(x.dtype)


def _round_up(a, b):
    return -(-a // b) * b


def _sublane(dtype):
    """Native sublane tiling: (8,128) f32, (16,128) bf16/f16, (32,128) int8/fp8."""
    itemsize = jnp.dtype(dtype).itemsize
    return 8 if itemsize >= 4 else 32 // itemsize


@functools.lru_cache(maxsize=1)
def _chip_config():
    """(block_bytes, vmem_limit_bytes, tensorcores_per_chip), generation-aware."""
    block_bytes, vmem_limit, cores = 2 << 20, 32 << 20, 1      # v5e-safe default
    try:
        kind = jax.devices()[0].device_kind.lower()
    except Exception:
        kind = ""
    if "v7" in kind:
        # ~3.2 TB/s per-TC HBM: 8 MiB blocks amortize the ~0.35us per-step
        # overhead; 2 bufs x (in+out) x 8 MiB = 32 MiB < 48 MiB < 64 MiB VMEM.
        block_bytes, vmem_limit, cores = 8 << 20, 48 << 20, 2
    elif "v6" in kind:
        # plenty of headroom below 128 MiB physical VMEM on v6e
        block_bytes, vmem_limit, cores = 4 << 20, 64 << 20, 1
    try:
        cap = pltpu.get_tpu_info().vmem_capacity_bytes
        vmem_limit = min(vmem_limit, max(cap - (8 << 20), 16 << 20))
    except Exception:
        pass
    return block_bytes, vmem_limit, cores


def _choose_layout(n, sublane):
    """Widest lane-dense width that needs NO padding, else (None, None)."""
    for w in (1024, 512, 256, 128):
        if n % (sublane * w) == 0:
            return w, n // w
    return None, None


def _swish_slab(x2d, tile_rows, vmem_limit):
    rows, width = x2d.shape
    grid = (pl.cdiv(rows, tile_rows),)   # ragged last block handled by Pallas
    return pl.pallas_call(
        _swish_kernel,
        out_shape=jax.ShapeDtypeStruct((rows, width), x2d.dtype),
        grid_spec=pltpu.PrefetchScalarGridSpec(
            num_scalar_prefetch=0,
            grid=grid,
            in_specs=[pl.BlockSpec((tile_rows, width), lambda i: (i, 0))],
            out_specs=pl.BlockSpec((tile_rows, width), lambda i: (i, 0)),
        ),
        compiler_params=pltpu.CompilerParams(
            dimension_semantics=("parallel",),   # megacore-shardable on v7x
            vmem_limit_bytes=vmem_limit,
        ),
    )(x2d)


@jax.jit
def swish(x):
    """Swish(beta=1): x * sigmoid(x), elementwise, any shape.

    Note: integer inputs are computed in f32 and cast back; f64 loses
    precision (computed in f32) — acceptable on TPU.
    """
    orig_shape = x.shape
    n = x.size
    if n == 0:
        return x

    sublane = _sublane(x.dtype)

    # Tiny inputs (<= one native tile): the XLA fusion is strictly cheaper
    # than a pallas custom-call launch.
    if n <= sublane * LANE:
        return _swish_jax(x)

    width, rows = _choose_layout(n, sublane)
    if width is None:
        # Unaligned size: a pad + output-slice path would cost up to ~3x the
        # minimum HBM traffic; the fused XLA op is already at roofline.
        return _swish_jax(x)

    block_bytes, vmem_limit, cores = _chip_config()
    itemsize = jnp.dtype(x.dtype).itemsize

    # Generation-sized blocks, rows a multiple of the native sublane count.
    tile_rows = max(sublane,
                    (block_bytes // (width * itemsize)) // sublane * sublane)
    tile_rows = min(tile_rows, rows)
    # Multi-TensorCore chips only (v7x): aim for >= 2 blocks per core so each
    # core still gets DMA prefetch overlap.  Never split on single-TC chips.
    if cores > 1:
        min_blocks = 2 * cores
        if rows >= min_blocks * sublane:
            tile_rows = min(tile_rows, _round_up(pl.cdiv(rows, min_blocks), sublane))

    x2d = jnp.ravel(x).reshape(rows, width)   # contiguous view: free under jit
    out2d = _swish_slab(x2d, tile_rows, vmem_limit)
    return out2d.reshape(orig_shape)          # free layout change, no copy


if __name__ == "__main__":
    key0, key1 = jax.random.split(jax.random.PRNGKey(0))

    # Small NCHW-like input (batch=2, channels=4, 16x16 spatial):
    # 2048 elements -> aligned, exercises the Pallas path.
    x = jax.random.normal(key0, (2, 4, 16, 16), dtype=jnp.float32)
    out = jax.block_until_ready(swish(x))
    ref = x * jax.nn.sigmoid(BETA * x)
    assert out.shape == x.shape and out.dtype == x.dtype
    assert jnp.allclose(out, ref, atol=1e-5, rtol=1e-5), float(
        jnp.max(jnp.abs(out - ref)))

    # Odd-sized input -> exercises the (plain-JAX) unaligned fallback path.
    x2 = jax.random.normal(key1, (3, 5, 7), dtype=jnp.float32)
    out2 = jax.block_until_ready(swish(x2))
    ref2 = x2 * jax.nn.sigmoid(BETA * x2)
    assert out2.shape == x2.shape and out2.dtype == x2.dtype
    assert jnp.allclose(out2, ref2, atol=1e-5, rtol=1e-5), float(
        jnp.max(jnp.abs(out2 - ref2)))

    print("KERNEL_OK")
</pallas_src>

<mosaic_0001>
module attributes {stable_mosaic.version = 11 : i64} {
  func.func @_swish_kernel(%arg0: i32, %arg1: memref<8x256xf32, #tpu.memory_space<vmem>>, %arg2: memref<8x256xf32, #tpu.memory_space<vmem>>) attributes {dimension_semantics = [#tpu.dimension_semantics<parallel>], iteration_bounds = array<i64: 1>, scalar_prefetch = 0 : i64, scratch_operands = 0 : i64, tpu.core_type = #tpu.core_type<tc>, window_params = [{transform_indices = @transform_0, window_bounds = array<i64: 8, 256>}, {transform_indices = @transform_1, window_bounds = array<i64: 8, 256>}]} {
    %c0 = arith.constant 0 : index
    %c0_0 = arith.constant 0 : index
    %0 = vector.load %arg1[%c0, %c0_0] : memref<8x256xf32, #tpu.memory_space<vmem>>, vector<8x256xf32>
    %cst = arith.constant 5.000000e-01 : f32
    %1 = vector.broadcast %cst : f32 to vector<8x256xf32>
    %2 = arith.mulf %1, %0 : vector<8x256xf32>
    %3 = math.tanh %2 : vector<8x256xf32>
    %cst_1 = arith.constant 5.000000e-01 : f32
    %4 = vector.broadcast %cst_1 : f32 to vector<8x256xf32>
    %5 = arith.mulf %4, %3 : vector<8x256xf32>
    %cst_2 = arith.constant 5.000000e-01 : f32
    %6 = vector.broadcast %cst_2 : f32 to vector<8x256xf32>
    %7 = arith.addf %5, %6 : vector<8x256xf32>
    %8 = arith.mulf %0, %7 : vector<8x256xf32>
    %c0_3 = arith.constant 0 : index
    %c0_4 = arith.constant 0 : index
    %9 = vector.load %arg2[%c0_3, %c0_4] : memref<8x256xf32, #tpu.memory_space<vmem>>, vector<8x256xf32>
    tpu.vector_store %arg2[%c0_3, %c0_4], %8 {strides = array<i32>} : memref<8x256xf32, #tpu.memory_space<vmem>>, vector<8x256xf32>,
    return
  }
  func.func @transform_0(%arg0: i32) -> (i32, i32) {
    %c0_i32 = arith.constant 0 : i32
    %c0_i32_0 = arith.constant 0 : i32
    return %arg0, %c0_i32 : i32, i32
  }
  func.func @transform_1(%arg0: i32) -> (i32, i32) {
    %c0_i32 = arith.constant 0 : i32
    %c0_i32_0 = arith.constant 0 : i32
    return %arg0, %c0_i32 : i32, i32
  }
}

</mosaic_0001>

<bundles_post_ra>
// kernel: swish.1
= control target key start
LH: loop header
LB: loop body
LE: loop exit
PB: predicated region body
PF: predicated region fallthrough
CT: control target
= control target key end

     0   :  { %s52_s0 = inlined_call_operand.vmem [shape: f32[8,256], index: 0, kind: input, shape index: {}]   ;;  %s53_s1 = inlined_call_operand.vmem [shape: f32[8,256], index: 1, kind: output, shape index: {}]  }
   0x1   :  { %v8_v0 = vld [vmem:[%s52_s0] sm:$0xff]  ;;  %v9_v1 = vld [vmem:[%s52_s0 + $0x8] sm:$0xff] }
   0x2   :  { %v10_v2 = vmul.f32 0.5, %v8_v0  ;;  %v11_v3 = vmul.f32 0.5, %v9_v1 }
   0x4   :  { %26 = vtanh.f32 %v10_v2 }
   0x5   :  { %28 = vtanh.f32 %v11_v3 }
   0xe   :  { %v27_v4 = vpop.eup %26 }
   0xf   :  { %v29_v5 = vpop.eup %28  ;;  %v14_v6 = vmul.f32 0.5, %v27_v4 }
  0x10   :  { %v15_v7 = vmul.f32 0.5, %v29_v5 }
  0x11   :  { %v16_v8 = vadd.f32 0.5, %v14_v6 }
  0x12   :  { %v17_v9 = vadd.f32 0.5, %v15_v7 }
  0x13   :  { %v18_v10 = vmul.f32 %v16_v8, %v8_v0 }
  0x14   :  { %v19_v11 = vmul.f32 %v17_v9, %v9_v1 }
  0x15   :  { %20 = vst [vmem:[%s53_s1] sm:$0xff] %v18_v10 }
  0x16   :  { %21 = vst [vmem:[%s53_s1 + $0x8] sm:$0xff] %v19_v11 }

</bundles_post_ra>
